<compile_context>
chip_gen: v6e
topology: v6e:2x2x1
jax: 0.10.0
libtpu: 0.0.40
codegen_flags: <defaults>
</compile_context>

<pallas_src>
import functools

import jax
import jax.numpy as jnp
import numpy as np
from jax.experimental import pallas as pl
from jax.experimental.pallas import tpu as pltpu

_BN_EPS = 1e-5
_PRELU_INIT = 0.25


def _round_up(x, m):
    return ((x + m - 1) // m) * m


def _tile_plan(n):
    """Node-axis padding and (row-tile, k-tile) sizes for the adj aggregation.

    Tiles are multiples of (8, 128) (lane-dense, v5e-friendly).  For large graphs the working set
    per step (adj + xw + h tiles, double-buffered) stays ~<3 MiB, well inside the scoped VMEM of
    all of v5e / v6e / v7x.
    """
    if n <= 1024:
        n_pad = _round_up(max(n, 8), 128)
        tk = n_pad                      # single reduction step; xw block stays resident
        tr = min(256, n_pad)
        while n_pad % tr:
            tr //= 2
    else:
        tr, tk = 512, 512               # 512x512 bf16 adj tile = 512 KiB
        n_pad = _round_up(n, 512)
    return n_pad, tr, tk


# ----------------------------- Pallas kernels ------------------------------ #


def _xw_kernel(x_ref, w_ref, o_ref):
    """xw = x @ W (bf16 MXU operands, f32 accumulation, bf16 output)."""
    o_ref[...] = jnp.dot(x_ref[...].astype(jnp.bfloat16), w_ref[...],
                         preferred_element_type=jnp.float32).astype(o_ref.dtype)


def _xw_affine_kernel(x_ref, s_ref, t_ref, w_ref, o_ref):
    """xw = (x * s + t) @ W -- previous layer's BatchNorm folded in as (s, t)."""
    x = x_ref[...] * s_ref[...] + t_ref[...]
    o_ref[...] = jnp.dot(x.astype(jnp.bfloat16), w_ref[...],
                         preferred_element_type=jnp.float32).astype(o_ref.dtype)


def _agg_kernel(adj_ref, xw_ref, b_ref, a_ref, mask_ref, *rest, apply_scale):
    """h[i] += adj[i,k] @ xw[k]; at the last k: +bias, PReLU, (prompt2 scale), BN partial stats."""
    if apply_scale:
        scale_ref, h_ref, ssum_ref, ssq_ref = rest
    else:
        h_ref, ssum_ref, ssq_ref = rest
        scale_ref = None

    # Hoist grid-position primitives to the kernel top level (never bind them inside pl.when
    # bodies -- nested cond jaxprs are not rewritten by the interpret/lowering machinery).
    k = pl.program_id(1)
    k_last = pl.num_programs(1) - 1

    @pl.when(k == 0)
    def _():
        h_ref[...] = jnp.zeros_like(h_ref)

    h_ref[...] += jnp.dot(adj_ref[...], xw_ref[...],
                          preferred_element_type=jnp.float32)

    @pl.when(k == k_last)
    def _():
        h = h_ref[...] + b_ref[...]
        h = jnp.where(h > 0, h, a_ref[...] * h)          # PReLU
        if apply_scale:
            h = h * scale_ref[...]                       # downstreamprompt (prompt2)
        h_ref[...] = h
        hm = h * mask_ref[...]                           # zero padded rows out of the statistics
        ssum_ref[...] = jnp.sum(hm, axis=0, keepdims=True)
        ssq_ref[...] = jnp.sum(hm * hm, axis=0, keepdims=True)


def _finalize_kernel(h_ref, s_ref, t_ref, o_ref, *, combine, alpha, half):
    """y = h * s + t (BatchNorm as per-feature affine); optionally combine the two GP branches."""
    y = h_ref[...] * s_ref[...] + t_ref[...]
    if combine:
        o_ref[...] = alpha * y[:, :half] + y[:, half:]
    else:
        o_ref[...] = y


# ----------------------------- pallas_call wrappers ------------------------ #


def gcn_xw(x, w, affine=None, *, tr):
    """Row-tiled x @ W (optionally with the previous BatchNorm fused as an input affine)."""
    n_pad, fin = x.shape
    fout = w.shape[1]
    grid = (n_pad // tr,)
    x_spec = pl.BlockSpec((tr, fin), lambda i: (i, 0))
    w_spec = pl.BlockSpec((fin, fout), lambda i: (0, 0))
    row_spec = pl.BlockSpec((1, fin), lambda i: (0, 0))
    out_spec = pl.BlockSpec((tr, fout), lambda i: (i, 0))
    out_shape = jax.ShapeDtypeStruct((n_pad, fout), jnp.bfloat16)
    params = pltpu.CompilerParams(dimension_semantics=("parallel",))
    if affine is None:
        return pl.pallas_call(
            _xw_kernel, grid=grid, in_specs=[x_spec, w_spec],
            out_specs=out_spec, out_shape=out_shape, compiler_params=params,
        )(x, w)
    s, t = affine
    return pl.pallas_call(
        _xw_affine_kernel, grid=grid,
        in_specs=[x_spec, row_spec, row_spec, w_spec],
        out_specs=out_spec, out_shape=out_shape, compiler_params=params,
    )(x, s, t, w)


def gcn_aggregate(adj, xw, b, a_row, mask, scale, *, tr, tk):
    """h = PReLU(adj @ xw + b) [* scale] with adj streamed in (row, k) tiles.

    Returns (h [Np, F] f32, ssum [Np//tr, F] f32, ssq [Np//tr, F] f32) where ssum / ssq are the
    per-row-tile sums / sums-of-squares over the valid rows (for BatchNorm).
    """
    n_pad = adj.shape[0]
    f = xw.shape[1]
    grid = (n_pad // tr, n_pad // tk)
    n_tiles = n_pad // tr
    row_spec = pl.BlockSpec((1, f), lambda i, k: (0, 0))
    in_specs = [
        pl.BlockSpec((tr, tk), lambda i, k: (i, k)),       # adj tile (streamed, bf16)
        pl.BlockSpec((tk, f), lambda i, k: (k, 0)),        # xw k-tile (bf16)
        row_spec,                                          # bias
        row_spec,                                          # PReLU slope (broadcast row)
        pl.BlockSpec((tr, 1), lambda i, k: (i, 0)),        # row-validity mask (for BN stats)
    ]
    args = [adj, xw, b, a_row, mask]
    if scale is not None:
        in_specs.append(row_spec)                          # prompt2 scale (last layer only)
        args.append(scale)
    out_shape = (
        jax.ShapeDtypeStruct((n_pad, f), jnp.float32),
        jax.ShapeDtypeStruct((n_tiles, f), jnp.float32),
        jax.ShapeDtypeStruct((n_tiles, f), jnp.float32),
    )
    out_specs = (
        pl.BlockSpec((tr, f), lambda i, k: (i, 0)),        # h (acts as the k-axis accumulator)
        pl.BlockSpec((1, f), lambda i, k: (i, 0)),         # partial sum
        pl.BlockSpec((1, f), lambda i, k: (i, 0)),         # partial sum of squares
    )
    kernel = functools.partial(_agg_kernel, apply_scale=scale is not None)
    return pl.pallas_call(
        kernel, grid=grid, in_specs=in_specs, out_specs=out_specs, out_shape=out_shape,
        compiler_params=pltpu.CompilerParams(
            dimension_semantics=("parallel", "arbitrary"),
            vmem_limit_bytes=32 * 1024 * 1024),
    )(*args)


def gcn_finalize(h, s, t, *, tr, combine=False, alpha=0.0):
    """y = h * s + t; with combine=True also returns alpha * y_branch1 + y_branch2."""
    n_pad, f = h.shape
    half = f // 2 if combine else f
    grid = (n_pad // tr,)
    kernel = functools.partial(_finalize_kernel, combine=combine,
                               alpha=float(alpha), half=half)
    return pl.pallas_call(
        kernel, grid=grid,
        in_specs=[pl.BlockSpec((tr, f), lambda i: (i, 0)),
                  pl.BlockSpec((1, f), lambda i: (0, 0)),
                  pl.BlockSpec((1, f), lambda i: (0, 0))],
        out_specs=pl.BlockSpec((tr, half), lambda i: (i, 0)),
        out_shape=jax.ShapeDtypeStruct((n_pad, half), jnp.float32),
        compiler_params=pltpu.CompilerParams(dimension_semantics=("parallel",)),
    )(h, s, t)


def _bn_affine(ssum_tiles, ssq_tiles, gamma, beta, n_valid):
    """Reduce per-tile partial sums -> training-mode BatchNorm1d as per-feature (s, t)."""
    ssum = jnp.sum(ssum_tiles, axis=0)
    ssq = jnp.sum(ssq_tiles, axis=0)
    mean = ssum / n_valid
    var = jnp.maximum(ssq / n_valid - mean * mean, 0.0)    # f32, clamp E[x^2]-E[x]^2
    s = gamma * jax.lax.rsqrt(var + _BN_EPS)
    t = beta - mean * s
    return s[None, :], t[None, :]


# ----------------------------- Parameter setup ----------------------------- #


def _xavier_uniform(key, shape):
    fan_in, fan_out = shape
    bound = (6.0 / (fan_in + fan_out)) ** 0.5
    return jax.random.uniform(key, shape, jnp.float32, -bound, bound)


def _pad_cols(x, f):
    return jnp.pad(x, ((0, 0), (0, f - x.shape[1])))


class GcnLayersPallas:
    """Pallas-TPU forward of the PyTorch GcnLayers module."""

    def __init__(self, n_in, n_h, num_layer=2, dropout=0.05,
                 GPextension=True, alpha=0.5, key=jax.random.PRNGKey(0)):
        self.n_in = n_in
        self.n_h = n_h
        self.num_layer = num_layer
        self.GPextension = GPextension
        self.alpha = alpha
        self.f = _round_up(n_h, 128)          # lane-dense padded feature width
        f = self.f
        keys = jax.random.split(key, num_layer + 2)

        # raw parameters (matching the PyTorch initialisation)
        self.conv_w = []
        for i in range(num_layer):
            fin = n_in if i == 0 else n_h
            self.conv_w.append(_xavier_uniform(keys[i], (fin, n_h)))
        self.conv_b = [jnp.zeros((n_h,), jnp.float32) for _ in range(num_layer)]
        self.prelu = [jnp.full((1,), _PRELU_INIT, jnp.float32) for _ in range(num_layer)]
        self.bn_gamma = [jnp.ones((n_h,), jnp.float32) for _ in range(num_layer)]
        self.bn_beta = [jnp.zeros((n_h,), jnp.float32) for _ in range(num_layer)]
        if GPextension:
            self.prompt1_w = _xavier_uniform(keys[num_layer], (1, n_in))
            self.prompt2_w = _xavier_uniform(keys[num_layer + 1], (1, n_h))

        # --- kernel-side parameters: feature-padded, weights pre-cast to bf16 ---
        self.w_pad = []
        for i in range(num_layer):
            w = _pad_cols(self.conv_w[i], f)
            if i > 0:
                w = jnp.pad(w, ((0, f - w.shape[0]), (0, 0)))
            self.w_pad.append(w.astype(jnp.bfloat16))
        self.b_row = [jnp.pad(b, (0, f - n_h))[None, :] for b in self.conv_b]
        self.a_row = [jnp.broadcast_to(a, (1, f)) for a in self.prelu]
        self.gamma_pad = [jnp.pad(g, (0, f - n_h)) for g in self.bn_gamma]
        self.beta_pad = [jnp.pad(b, (0, f - n_h)) for b in self.bn_beta]

        if GPextension:
            # Fused two-branch weights (branch1 | branch2 along the feature axis) so each adj tile
            # is loaded once for both GP branches.  prompt1 is folded into layer 0's weights.
            w0 = _pad_cols(self.conv_w[0], f)
            w0_b1 = self.prompt1_w[0][:, None] * w0
            self.w_gp = [jnp.concatenate([w0_b1, w0], axis=1).astype(jnp.bfloat16)]
            for i in range(1, num_layer):
                w = jnp.pad(self.conv_w[i], ((0, f - n_h), (0, f - n_h)))
                z = jnp.zeros((f, f), jnp.float32)
                self.w_gp.append(jnp.block([[w, z], [z, w]]).astype(jnp.bfloat16))
            cat = lambda v: jnp.concatenate([v, v], axis=-1)
            self.b_row_gp = [cat(b) for b in self.b_row]
            self.a_row_gp = [cat(a) for a in self.a_row]
            self.gamma_gp = [cat(g) for g in self.gamma_pad]
            self.beta_gp = [cat(b) for b in self.beta_pad]
            # prompt2 scales only the branch-2 half of the last layer's activation.
            p2 = jnp.pad(self.prompt2_w[0], (0, f - n_h))
            self.scale_gp = jnp.concatenate([jnp.ones((f,), jnp.float32), p2])[None, :]

    def __call__(self, seq, adj, LP=True, GPextension=False):
        n = seq.shape[1]
        n_pad, tr, tk = _tile_plan(n)
        x = jnp.squeeze(seq, axis=0)
        x = jnp.pad(x, ((0, n_pad - n), (0, 0)))                              # [Np, Fin]
        adj_p = jnp.pad(adj, ((0, n_pad - n), (0, n_pad - n))).astype(jnp.bfloat16)
        mask = (jnp.arange(n_pad) < n).astype(jnp.float32)[:, None]           # valid-row mask

        if GPextension:
            ws, bs, a_rows = self.w_gp, self.b_row_gp, self.a_row_gp
            gammas, betas = self.gamma_gp, self.beta_gp
            last_scale = self.scale_gp if self.GPextension else None
        else:
            ws, bs, a_rows = self.w_pad, self.b_row, self.a_row
            gammas, betas = self.gamma_pad, self.beta_pad
            last_scale = None

        h = x
        affine = None
        for i in range(self.num_layer):
            xw = gcn_xw(h, ws[i], affine, tr=tr)
            scale = last_scale if i == self.num_layer - 1 else None
            h, ssum, ssq = gcn_aggregate(adj_p, xw, bs[i], a_rows[i], mask, scale,
                                         tr=tr, tk=tk)
            affine = _bn_affine(ssum, ssq, gammas[i], betas[i], n) if LP else None
            # TODO(synk): training-mode dropout (p=0.05) not implemented; eval semantics used.

        if GPextension:
            if affine is None:
                f2 = h.shape[1]
                affine = (jnp.ones((1, f2), jnp.float32), jnp.zeros((1, f2), jnp.float32))
            out = gcn_finalize(h, affine[0], affine[1], tr=tr,
                               combine=True, alpha=self.alpha)
        elif LP:
            out = gcn_finalize(h, affine[0], affine[1], tr=tr)
        else:
            out = h
        return out[:n, :self.n_h][None, ...]                                  # [1, N, n_h]


# ----------------------- plain-jnp reference (validation) ------------------ #


def _reference_forward(model, seq, adj, LP=True, GPextension=False):
    """Same math as the Pallas pipeline (incl. bf16 MXU operands), in plain jnp."""
    n = seq.shape[1]
    x = jnp.squeeze(seq, axis=0)
    adj_bf = adj.astype(jnp.bfloat16)
    if GPextension:
        ws, bs, a_rows = model.w_gp, model.b_row_gp, model.a_row_gp
        gammas, betas = model.gamma_gp, model.beta_gp
        last_scale = model.scale_gp if model.GPextension else None
    else:
        ws, bs, a_rows = model.w_pad, model.b_row, model.a_row
        gammas, betas = model.gamma_pad, model.beta_pad
        last_scale = None
    h, affine = x, None
    for i in range(model.num_layer):
        xin = h if affine is None else h * affine[0] + affine[1]
        xw = jnp.dot(xin.astype(jnp.bfloat16), ws[i],
                     preferred_element_type=jnp.float32).astype(jnp.bfloat16)
        h = jnp.dot(adj_bf, xw, preferred_element_type=jnp.float32) + bs[i]
        h = jnp.where(h > 0, h, a_rows[i] * h)
        if i == model.num_layer - 1 and last_scale is not None:
            h = h * last_scale
        if LP:
            mean = jnp.mean(h, axis=0)
            var = jnp.maximum(jnp.mean(h * h, axis=0) - mean * mean, 0.0)
            s = gammas[i] * jax.lax.rsqrt(var + _BN_EPS)
            t = betas[i] - mean * s
            affine = (s[None, :], t[None, :])
        else:
            affine = None
    y = h * affine[0] + affine[1] if LP else h
    if GPextension:
        f = model.f
        y = model.alpha * y[:, :f] + y[:, f:]
    return y[:n, :model.n_h][None, ...]


# ----------------------------------- Main ---------------------------------- #

if __name__ == "__main__":
    key = jax.random.PRNGKey(0)
    k_seq, k_adj, k_params = jax.random.split(key, 3)

    N, n_in, n_h, num_layer = 16, 8, 32, 2
    seq = jax.random.normal(k_seq, (1, N, n_in), jnp.float32)

    # symmetric, self-looped, row-normalised adjacency
    a = jax.random.uniform(k_adj, (N, N), jnp.float32)
    a = (a + a.T) * 0.5 + jnp.eye(N, dtype=jnp.float32)
    adj = a / jnp.sum(a, axis=1, keepdims=True)

    model = GcnLayersPallas(n_in, n_h, num_layer=num_layer,
                            GPextension=True, alpha=0.5, key=k_params)

    out_default = model(seq, adj)                    # forward(..., LP=True, GPextension=False)
    out_gpe = model(seq, adj, GPextension=True)      # GP-extension branch
    out_nolp = model(seq, adj, LP=False)             # no-BatchNorm path
    jax.block_until_ready((out_default, out_gpe, out_nolp))

    for out in (out_default, out_gpe, out_nolp):
        assert out.shape == (1, N, n_h)
        assert jnp.all(jnp.isfinite(out))

    # validate the tiled Pallas pipeline against a plain-jnp implementation of the same math
    for got, lp, gpe in ((out_default, True, False),
                         (out_gpe, True, True),
                         (out_nolp, False, False)):
        want = _reference_forward(model, seq, adj, LP=lp, GPextension=gpe)
        np.testing.assert_allclose(np.asarray(got), np.asarray(want), rtol=5e-2, atol=5e-2)

    print("KERNEL_OK")
</pallas_src>

<mosaic_0001>
module attributes {stable_mosaic.version = 11 : i64} {
  func.func @_xw_kernel(%arg0: i32, %arg1: memref<128x8xf32, #tpu.memory_space<vmem>>, %arg2: memref<8x128xbf16, #tpu.memory_space<vmem>>, %arg3: memref<128x128xbf16, #tpu.memory_space<vmem>>) attributes {dimension_semantics = [#tpu.dimension_semantics<parallel>], iteration_bounds = array<i64: 1>, scalar_prefetch = 0 : i64, scratch_operands = 0 : i64, tpu.core_type = #tpu.core_type<tc>, window_params = [{transform_indices = @transform_0, window_bounds = array<i64: 128, 8>}, {pipeline_mode = #tpu.pipeline_mode<synchronous>, transform_indices = @transform_1, window_bounds = array<i64: 8, 128>}, {transform_indices = @transform_2, window_bounds = array<i64: 128, 128>}]} {
    %c0 = arith.constant 0 : index
    %c0_0 = arith.constant 0 : index
    %0 = vector.load %arg1[%c0, %c0_0] : memref<128x8xf32, #tpu.memory_space<vmem>>, vector<128x8xf32>
    %1 = arith.truncf %0 : vector<128x8xf32> to vector<128x8xbf16>
    %c0_1 = arith.constant 0 : index
    %c0_2 = arith.constant 0 : index
    %2 = vector.load %arg2[%c0_1, %c0_2] : memref<8x128xbf16, #tpu.memory_space<vmem>>, vector<8x128xbf16>
    %cst = arith.constant dense<0.000000e+00> : vector<128x128xf32>
    %3 = tpu.matmul %1, %2, %cst {dimension_numbers = #tpu.dot_dimension_numbers<[1], [0], [0], [1], [0, 0, 1, 1], [], []>} : vector<128x8xbf16>, vector<8x128xbf16>, vector<128x128xf32> -> vector<128x128xf32>
    %4 = arith.truncf %3 : vector<128x128xf32> to vector<128x128xbf16>
    %c0_3 = arith.constant 0 : index
    %c0_4 = arith.constant 0 : index
    %5 = vector.load %arg3[%c0_3, %c0_4] : memref<128x128xbf16, #tpu.memory_space<vmem>>, vector<128x128xbf16>
    tpu.vector_store %arg3[%c0_3, %c0_4], %4 {strides = array<i32>} : memref<128x128xbf16, #tpu.memory_space<vmem>>, vector<128x128xbf16>,
    return
  }
  func.func @transform_0(%arg0: i32) -> (i32, i32) {
    %c0_i32 = arith.constant 0 : i32
    %c0_i32_0 = arith.constant 0 : i32
    return %arg0, %c0_i32 : i32, i32
  }
  func.func @transform_1(%arg0: i32) -> (i32, i32) {
    %c0_i32 = arith.constant 0 : i32
    %c0_i32_0 = arith.constant 0 : i32
    %c0_i32_1 = arith.constant 0 : i32
    return %c0_i32, %c0_i32_0 : i32, i32
  }
  func.func @transform_2(%arg0: i32) -> (i32, i32) {
    %c0_i32 = arith.constant 0 : i32
    %c0_i32_0 = arith.constant 0 : i32
    return %arg0, %c0_i32 : i32, i32
  }
}

</mosaic_0001>

<bundles_post_ra>
// kernel: tpu_custom_call.1
= control target key start
LH: loop header
LB: loop body
LE: loop exit
PB: predicated region body
PF: predicated region fallthrough
CT: control target
= control target key end

     0   :  { %vm63_vm0 = vcmask 1043456   ;;  %vm38_vm1 = vcmask 64512   ;;  %s483_s0 = inlined_call_operand.vmem [shape: f32[128,8], index: 0, kind: input, shape index: {}]   ;;  %s484_s1 = inlined_call_operand.vmem [shape: bf16[8,128], index: 1, kind: input, shape index: {}]   ;;  %s485_s2 = inlined_call_operand.hbm [shape: bf16[128,128], index: 2, kind: output, shape index: {}]  }
   0x1   :  { %v37_v0 = vld [vmem:[%s484_s1] sm:$0xf]  ;;  %v14_v2 = vld [vmem:[%s483_s0 + $0x8] sm:$0xff]  ;;  %v15_v7 = vld [vmem:[%s483_s0 + $0x10] sm:$0xff] }
   0x2   :  { %v13_v1 = vld [vmem:[%s483_s0] sm:$0xff]  ;;  %376 = vmatprep.subr.msk.bf16.mxu0 %vm63_vm0, %v37_v0  ;;  %377 = vmatprep.subr.msk.bf16.mxu1 %vm63_vm0, %v37_v0  ;;  %v65_v3 = vsel %vm63_vm0, %v37_v0, 0  ;;  %v22_v6 = vld [vmem:[%s483_s0 + $0x48] sm:$0xff]  ;;  %v16_v9 = vld [vmem:[%s483_s0 + $0x18] sm:$0xff] }
   0x3   :  { %v29_v4 = vpack.c.bf16 %v14_v2, %v13_v1  ;;  %v21_v5 = vld [vmem:[%s483_s0 + $0x40] sm:$0xff]  ;;  %357 = vmatpush3.bf16.msra.mxu0 %v65_v3  ;;  %375 = vmatpush3.bf16.msra.mxu1 %v65_v3  ;;  %v23_v10 = vld [vmem:[%s483_s0 + $0x50] sm:$0xff]  ;;  %v24_v11 = vld [vmem:[%s483_s0 + $0x58] sm:$0xff]  ;;  %v30_v12 = vpack.c.bf16 %v16_v9, %v15_v7 }
   0x4   :  { %v33_v8 = vpack.c.bf16 %v22_v6, %v21_v5  ;;  %v34_v13 = vpack.c.bf16 %v24_v11, %v23_v10  ;;  %v17_v14 = vld [vmem:[%s483_s0 + $0x20] sm:$0xff]  ;;  %v18_v15 = vld [vmem:[%s483_s0 + $0x28] sm:$0xff]  ;;  %v19_v20 = vld [vmem:[%s483_s0 + $0x30] sm:$0xff] }
   0x5   :  { %358 = vmatprep.mubr.msk.bf16.mxu0 %vm38_vm1, %v29_v4  ;;  %v25_v16 = vld [vmem:[%s483_s0 + $0x60] sm:$0xff]  ;;  %v31_v17 = vpack.c.bf16 %v18_v15, %v17_v14  ;;  %v26_v18 = vld [vmem:[%s483_s0 + $0x68] sm:$0xff] }
   0x6   :  { %366 = vmatprep.mubr.msk.bf16.mxu1 %vm38_vm1, %v33_v8  ;;  %359 = vmatmul.mubr.msk.bf16.vlgmr.msra.gmra.mxu0 %vm38_vm1, %v30_v12  ;;  %v35_v19 = vpack.c.bf16 %v26_v18, %v25_v16 }
   0x7   :  { %367 = vmatmul.mubr.msk.bf16.vlgmr.msra.gmra.mxu1 %vm38_vm1, %v34_v13 }
   0x8   :  { %7 = vsyncpa [#allocation3], 0  ;;  %362 = vmatprep.mubr.msk.bf16.mxu0 %vm38_vm1, %v31_v17  ;;  %v20_v21 = vld [vmem:[%s483_s0 + $0x38] sm:$0xff]  ;;  %v27_v22 = vld [vmem:[%s483_s0 + $0x70] sm:$0xff]  ;;  %370 = vmatprep.mubr.msk.bf16.mxu1 %vm38_vm1, %v35_v19 }
   0x9   :  { %v28_v23 = vld [vmem:[%s483_s0 + $0x78] sm:$0xff]  ;;  %v32_v24 = vpack.c.bf16 %v20_v21, %v19_v20  ;;  %s403_s0 = smov [#allocation2]  }
   0xa   :  { %v36_v25 = vpack.c.bf16 %v28_v23, %v27_v22  ;;  %s249_s14 = sshll.u32 %s403_s0, 4  ;;  %s250_s14 = int_to_ptr.vmem [resolvable:$true] %s249_s14 }
   0xb   :  { %s381_s15 = scalar_lea.vmem %s250_s14, 1024  ;;  %p386_p1 = scmp.lt.s32.totalorder %s250_s14, %s250_s14 }
   0xc   :  { %p382_p0 = scmp.ne.s32.totalorder %s250_s14, %s381_s15  ;;  %p387_p2 = scmp.lt.s32.totalorder %s381_s15, %s381_s15 }
   0xe   :  { %363 = vmatmul.mubr.msk.bf16.gmra.mxu0 %vm38_vm1, %v32_v24  ;;  %p388_p3 = por %p387_p2, %p386_p1 }
   0xf   :  { %371 = vmatmul.mubr.msk.bf16.gmra.mxu1 %vm38_vm1, %v36_v25 }
  0x10   :  { %p389_p4 = pnand %p388_p3, %p382_p0 }
  0xc6   :  { %v360_v26 = vpop.f32.mrf.mxu0 }
  0xc7   :  { %v368_v27 = vpop.f32.mrf.mxu1 }
  0xc8   :  { %v101_v28 = vpop.f32.mrf.mxu0 }
  0xc9   :  { %v133_v29 = vpop.f32.mrf.mxu1 }
  0xca   :  { %v361_v30 = vpop.f32.mrf.mxu0 }
  0xcb   :  { %v369_v31 = vpop.f32.mrf.mxu1  ;;  %v308_v32 = vpack.c.bf16 %v361_v30, %v360_v26 }
  0xcc   :  { %v328_v33 = vpack.c.bf16 %v369_v31, %v368_v27  ;;  %v104_v34 = vpop.f32.mrf.mxu0 }
  0xcd   :  { %v136_v35 = vpop.f32.mrf.mxu1  ;;  %340 = vst [vmem:[#allocation2 + $0x8] sm:$0xff] %v308_v32   ;;  %v303_v36 = vpack.c.bf16 %v104_v34, %v101_v28 }
  0xce   :  { %344 = vst [vmem:[#allocation2 + $0x28] sm:$0xff] %v328_v33   ;;  %v323_v37 = vpack.c.bf16 %v136_v35, %v133_v29  ;;  %v364_v38 = vpop.f32.mrf.mxu0 }
  0xcf   :  { %v372_v39 = vpop.f32.mrf.mxu1  ;;  %304 = vst [vmem:[#allocation2] sm:$0xff] %v303_v36  }
  0xd0   :  { %343 = vst [vmem:[#allocation2 + $0x20] sm:$0xff] %v323_v37   ;;  %v117_v40 = vpop.f32.mrf.mxu0 }
  0xd1   :  { %v149_v41 = vpop.f32.mrf.mxu1 }
  0xd2   :  { %v365_v42 = vpop.f32.mrf.mxu0 }
  0xd3   :  { %v373_v43 = vpop.f32.mrf.mxu1  ;;  %v318_v44 = vpack.c.bf16 %v365_v42, %v364_v38 }
  0xd4   :  { %v338_v45 = vpack.c.bf16 %v373_v43, %v372_v39  ;;  %v120_v46 = vpop.f32.mrf.mxu0 }
  0xd5   :  { %v152_v47 = vpop.f32.mrf.mxu1  ;;  %342 = vst [vmem:[#allocation2 + $0x18] sm:$0xff] %v318_v44   ;;  %v313_v48 = vpack.c.bf16 %v120_v46, %v117_v40 }
  0xd6   :  { %346 = vst [vmem:[#allocation2 + $0x38] sm:$0xff] %v338_v45   ;;  %v333_v49 = vpack.c.bf16 %v152_v47, %v149_v41 }
  0xd7   :  { %341 = vst [vmem:[#allocation2 + $0x10] sm:$0xff] %v313_v48  }
  0xd8   :  { %345 = vst [vmem:[#allocation2 + $0x30] sm:$0xff] %v333_v49  }
  0xd9   :  { %392 = shalt.err (!%p389_p4)
}
  0xda   :  { %s404_s16 = smov 64   ;;  %s405_s17 = smov 4  }
  0xdb   :  { %255 = dma.vmem_to_hbm [thread:$0]  %s250_s14, 1024, %s485_s2, [#allocation3], %s404_s16, %s404_s16, %s405_s17  }
  0xdc   :  { %401 = dma.done.wait [#allocation3], 1024  }
  0xdd   :  { %402 = vsyncadd [#allocation3], 4294966272 }
  0xde   :  { %259 = vsyncpa [#allocation3], 1 }

</bundles_post_ra>
